<compile_context>
chip_gen: v7x
topology: tpu7x:2x2x1
jax: 0.10.0
libtpu: 0.0.40
codegen_flags: <defaults>
</compile_context>

<pallas_src>
import functools

import jax
import jax.numpy as jnp
from jax.experimental import pallas as pl
from jax.experimental.pallas import tpu as pltpu


# ---------------------------------------------------------------------------
# Kernels
# ---------------------------------------------------------------------------
def _cgp_kernel_resident(p_ref, b_ref, x_ref, o_ref):
    # p_ref: (O*V, C*V)  folded conv ⊗ propagator weights (bf16, VMEM-resident)
    # b_ref: (O*V, 1)    per-output-row bias (f32, resident)
    # x_ref: (C*V, TL)   lane-dense input tile (native dtype)
    # o_ref: (O*V, TL)
    x = x_ref[...].astype(p_ref.dtype)
    acc = jnp.dot(p_ref[...], x, preferred_element_type=jnp.float32)   # MXU
    o_ref[...] = (acc + b_ref[...]).astype(o_ref.dtype)


def _cgp_kernel_ktiled(p_ref, b_ref, x_ref, o_ref, acc_ref):
    # Grid = (lane, k); k is the reduction axis over C*V (last, "arbitrary").
    k = pl.program_id(1)

    @pl.when(k == 0)
    def _():
        acc_ref[...] = jnp.zeros_like(acc_ref)

    x = x_ref[...].astype(p_ref.dtype)
    acc_ref[...] += jnp.dot(p_ref[...], x, preferred_element_type=jnp.float32)

    @pl.when(k == pl.num_programs(1) - 1)
    def _():
        o_ref[...] = (acc_ref[...] + b_ref[...]).astype(o_ref.dtype)


# ---------------------------------------------------------------------------
# Sizing helpers
# ---------------------------------------------------------------------------
def _vmem_limit_bytes():
    """Per-generation VMEM budget (v7x: 64 MiB physical; v5e/v6e: 128 MiB)."""
    try:
        cap = int(pltpu.get_tpu_info().vmem_capacity_bytes)
    except Exception:
        cap = 64 * 1024 * 1024            # conservative (v7x-sized) fallback
    return max(32 * 1024 * 1024, min((cap * 3) // 4, 100 * 1024 * 1024))


def _pick_lane_tile(nl_padded, per_lane_bytes, budget):
    """Largest 128-multiple lane tile dividing nl_padded that fits the VMEM
    budget (double-buffered) and leaves >=2 grid steps (megacore)."""
    for cand in (8192, 4096, 2048, 1024, 512, 256, 128):
        if nl_padded % cand:
            continue
        if nl_padded > 128 and nl_padded // cand < 2:
            continue                       # keep both v7x TensorCores busy
        if cand * per_lane_bytes <= budget:
            return cand
    return 128


def _pick_cv_tile(cv_padded, ov, p_itemsize, budget):
    """Largest 128-multiple C*V tile whose (double-buffered) P slab fits."""
    cand = (cv_padded // 128) * 128
    while cand >= 128:
        if cv_padded % cand == 0 and 2 * ov * cand * p_itemsize <= budget:
            return cand
        cand -= 128
    return 128


# ---------------------------------------------------------------------------
# Forward pass
# ---------------------------------------------------------------------------
def cgp_ode_block(x, adj, w_mlp, b_mlp, *, time, step_size, alpha=1.0,
                  compute_dtype=jnp.bfloat16, lane_tile=None, k_tile=None):
    """Pallas implementation of CGPODEBlock.forward(x, adj).

    x:      (N, C, V, L)  activations (NCVL; V = num_nodes, L = seq_len)
    adj:    (V, V)
    w_mlp:  (O, (nfe+1)*C, 1, 1)  Conv2d(1x1) weight
    b_mlp:  (O,)                   Conv2d(1x1) bias
    returns (N, O, V, L) in x.dtype
    """
    n, c, v, l = x.shape
    # NOTE: torchdiffeq adds a final partial step when time/step_size is not
    # integral; the module's mlp width already assumes it IS integral
    # (estimated_nfe = round(time/step_size)), so parity is kept here.
    nfe = int(round(time / step_size))
    k_states = nfe + 1
    o = w_mlp.shape[0]
    assert w_mlp.shape[1] == k_states * c
    hp = jax.lax.Precision.HIGHEST

    # ---- tiny (V,V) glue, plain JAX, done once ----------------------------
    # Symmetric adjacency normalization (zero row-degree -> inf, same as the
    # PyTorch module; parity kept on purpose).
    adj_i = adj.astype(jnp.float32) + jnp.eye(v, dtype=jnp.float32)
    d = adj_i.sum(axis=1)
    d_inv_sqrt = d ** -0.5
    adj_norm = d_inv_sqrt[:, None] * adj_i * d_inv_sqrt[None, :]

    coef = 0.5 * float(alpha) * float(step_size)
    m = (1.0 - coef) * jnp.eye(v, dtype=jnp.float32) + coef * adj_norm
    mk = [jnp.eye(v, dtype=jnp.float32)]
    for _ in range(nfe):
        mk.append(jnp.matmul(mk[-1], m, precision=hp))
    mks = jnp.stack(mk, axis=0)                                    # (K, V, V)

    # Conv2d(1x1) weight (O, K*C, 1, 1): channel concat is k-major.
    w_kc = w_mlp.reshape(o, k_states, c).astype(jnp.float32)       # (O, K, C)
    # Fold conv + ODE propagator (f32, HIGHEST), then cast to compute dtype.
    p = jnp.einsum('okc,kvw->ovcw', w_kc, mks,
                   precision=hp).reshape(o * v, c * v)
    p = p.astype(compute_dtype)
    b_rows = jnp.repeat(b_mlp.astype(jnp.float32), v).reshape(o * v, 1)

    out_dtype = x.dtype
    ov, cv = o * v, c * v
    nl = n * l
    nl_pad = ((nl + 127) // 128) * 128

    # Lane-dense input slab: fold (batch, seq) into the lane axis; pad to a
    # full-width (128-multiple) lane extent. allow_input_fusion lets XLA fuse
    # this layout shuffle into the kernel's input DMA.
    x_flat = jnp.transpose(x, (1, 2, 0, 3)).reshape(cv, nl)
    if nl_pad != nl:
        x_flat = jnp.pad(x_flat, ((0, 0), (0, nl_pad - nl)))

    vmem_limit = _vmem_limit_bytes()
    p_itemsize = jnp.dtype(compute_dtype).itemsize
    x_itemsize = jnp.dtype(x.dtype).itemsize
    o_itemsize = jnp.dtype(out_dtype).itemsize
    p_bytes = ov * cv * p_itemsize

    # Resident-P path unless P would eat too much of the VMEM budget.
    use_ktile = (k_tile is not None) or (2 * p_bytes > vmem_limit // 3)

    if not use_ktile:
        per_lane = 2 * (cv * x_itemsize + ov * o_itemsize)
        budget = vmem_limit - 2 * p_bytes - 2 * ov * 4 - (2 << 20)
        if lane_tile is None:
            lane_tile = _pick_lane_tile(nl_pad, per_lane, budget)
        assert nl_pad % lane_tile == 0 and lane_tile % 128 == 0
        grid = (nl_pad // lane_tile,)
        cost = pl.CostEstimate(
            flops=2 * ov * cv * nl_pad, transcendentals=0,
            bytes_accessed=(p_bytes + ov * 4 + cv * nl_pad * x_itemsize
                            + ov * nl_pad * o_itemsize))
        y_flat = pl.pallas_call(
            _cgp_kernel_resident,
            out_shape=jax.ShapeDtypeStruct((ov, nl_pad), out_dtype),
            grid=grid,
            in_specs=[
                pl.BlockSpec((ov, cv), lambda i: (0, 0)),          # P resident
                pl.BlockSpec((ov, 1), lambda i: (0, 0)),           # bias
                pl.BlockSpec((cv, lane_tile), lambda i: (0, i)),   # x lane tile
            ],
            out_specs=pl.BlockSpec((ov, lane_tile), lambda i: (0, i)),
            compiler_params=pltpu.CompilerParams(
                dimension_semantics=("parallel",),
                vmem_limit_bytes=vmem_limit,
                allow_input_fusion=[False, False, True],
            ),
            cost_estimate=cost,
        )(p, b_rows, x_flat)
    else:
        # Pad the contraction axis to a 128-multiple so P/x can be K-tiled
        # (zero columns of P / zero rows of x contribute nothing to the dot).
        cv_pad = ((cv + 127) // 128) * 128
        if cv_pad != cv:
            p = jnp.pad(p, ((0, 0), (0, cv_pad - cv)))
            x_flat = jnp.pad(x_flat, ((0, cv_pad - cv), (0, 0)))
        if k_tile is None:
            k_tile = _pick_cv_tile(cv_pad, ov, p_itemsize, vmem_limit // 3)
        assert cv_pad % k_tile == 0 and k_tile % 128 == 0
        per_lane = 2 * (k_tile * x_itemsize + ov * o_itemsize) + ov * 4
        budget = (vmem_limit - 2 * ov * k_tile * p_itemsize
                  - 2 * ov * 4 - (2 << 20))
        if lane_tile is None:
            lane_tile = _pick_lane_tile(nl_pad, per_lane, budget)
        assert nl_pad % lane_tile == 0 and lane_tile % 128 == 0
        grid = (nl_pad // lane_tile, cv_pad // k_tile)
        cost = pl.CostEstimate(
            flops=2 * ov * cv_pad * nl_pad, transcendentals=0,
            bytes_accessed=(ov * cv_pad * p_itemsize + ov * 4
                            + cv_pad * nl_pad * x_itemsize
                            + ov * nl_pad * o_itemsize))
        y_flat = pl.pallas_call(
            _cgp_kernel_ktiled,
            out_shape=jax.ShapeDtypeStruct((ov, nl_pad), out_dtype),
            grid=grid,
            in_specs=[
                pl.BlockSpec((ov, k_tile), lambda i, k: (0, k)),        # P slab
                pl.BlockSpec((ov, 1), lambda i, k: (0, 0)),             # bias
                pl.BlockSpec((k_tile, lane_tile), lambda i, k: (k, i)), # x tile
            ],
            out_specs=pl.BlockSpec((ov, lane_tile), lambda i, k: (0, i)),
            scratch_shapes=[pltpu.VMEM((ov, lane_tile), jnp.float32)],
            compiler_params=pltpu.CompilerParams(
                dimension_semantics=("parallel", "arbitrary"),
                vmem_limit_bytes=vmem_limit,
                allow_input_fusion=[False, False, True],
            ),
            cost_estimate=cost,
        )(p, b_rows, x_flat)

    if nl_pad != nl:
        y_flat = y_flat[:, :nl]
    # (O*V, N*L) -> (N, O, V, L)
    return jnp.transpose(y_flat.reshape(o, v, n, l), (2, 0, 1, 3))


# ---------------------------------------------------------------------------
# Pure-JAX reference (mirrors the PyTorch forward step-by-step)
# ---------------------------------------------------------------------------
def cgp_ode_block_ref(x, adj, w_mlp, b_mlp, *, time, step_size, alpha=1.0):
    hp = jax.lax.Precision.HIGHEST
    n, c, v, l = x.shape
    nfe = int(round(time / step_size))
    adj_i = adj.astype(jnp.float32) + jnp.eye(v, dtype=jnp.float32)
    d = adj_i.sum(axis=1)
    di = d ** -0.5
    a_norm = di[:, None] * adj_i * di[None, :]

    outs = []
    y = x.astype(jnp.float32)
    for _ in range(nfe):                        # fixed-step Euler
        outs.append(y)
        ay = jnp.einsum('ncwl,vw->ncvl', y, a_norm, precision=hp)
        y = y + step_size * (0.5 * alpha * (ay - y))
    outs.append(y)                              # out[-1] from odeint
    h = jnp.concatenate(outs, axis=1)           # (N, (nfe+1)*C, V, L)
    w2 = w_mlp.reshape(w_mlp.shape[0], -1)
    return (jnp.einsum('om,nmvl->novl', w2, h, precision=hp)
            + b_mlp[None, :, None, None])


if __name__ == "__main__":
    key = jax.random.PRNGKey(0)
    kx, ka, kw, kb = jax.random.split(key, 4)

    TIME, STEP, ALPHA = 1.0, 0.25, 1.0
    K = int(round(TIME / STEP)) + 1             # estimated_nfe + 1 states

    # ---- test 1: resident-P path; N*L = 192 -> padded to 256 (2 lane steps,
    # exercises padding + full-width stores + the >=2-step megacore rule). ---
    N, C, V, L = 8, 4, 16, 24
    OUT_DIM = 8
    x = jax.random.normal(kx, (N, C, V, L), dtype=jnp.float32)
    adj = jax.random.uniform(ka, (V, V), dtype=jnp.float32)
    w_mlp = 0.1 * jax.random.normal(kw, (OUT_DIM, K * C, 1, 1), dtype=jnp.float32)
    b_mlp = 0.1 * jax.random.normal(kb, (OUT_DIM,), dtype=jnp.float32)

    fwd = jax.jit(functools.partial(cgp_ode_block,
                                    time=TIME, step_size=STEP, alpha=ALPHA))
    out = jax.block_until_ready(fwd(x, adj, w_mlp, b_mlp))
    ref = cgp_ode_block_ref(x, adj, w_mlp, b_mlp,
                            time=TIME, step_size=STEP, alpha=ALPHA)
    assert out.shape == (N, OUT_DIM, V, L)
    # Tolerance covers the bf16 P/x contraction vs the f32 HIGHEST reference
    # (typical max error ~1e-2 at these magnitudes).
    assert jnp.allclose(out, ref.astype(out.dtype), atol=2e-2, rtol=2e-2), \
        float(jnp.max(jnp.abs(out - ref)))

    # ---- test 2: force the K-tiled accumulator path (C*V = 256, 2 K steps) --
    N2, C2, V2, L2, O2 = 2, 4, 64, 32, 4
    kx2, ka2, kw2, kb2 = jax.random.split(jax.random.PRNGKey(1), 4)
    x2 = jax.random.normal(kx2, (N2, C2, V2, L2), dtype=jnp.float32)
    adj2 = jax.random.uniform(ka2, (V2, V2), dtype=jnp.float32)
    w2 = 0.1 * jax.random.normal(kw2, (O2, K * C2, 1, 1), dtype=jnp.float32)
    b2 = 0.1 * jax.random.normal(kb2, (O2,), dtype=jnp.float32)

    fwd_kt = jax.jit(functools.partial(cgp_ode_block, time=TIME,
                                       step_size=STEP, alpha=ALPHA,
                                       k_tile=128))
    out2 = jax.block_until_ready(fwd_kt(x2, adj2, w2, b2))
    ref2 = cgp_ode_block_ref(x2, adj2, w2, b2,
                             time=TIME, step_size=STEP, alpha=ALPHA)
    assert out2.shape == (N2, O2, V2, L2)
    assert jnp.allclose(out2, ref2.astype(out2.dtype), atol=2e-2, rtol=2e-2), \
        float(jnp.max(jnp.abs(out2 - ref2)))

    print("KERNEL_OK")
</pallas_src>

<mosaic_0001>
module attributes {stable_mosaic.version = 11 : i64} {
  func.func @_cgp_kernel_resident(%arg0: i32, %arg1: memref<128x64xbf16, #tpu.memory_space<vmem>>, %arg2: memref<128x1xf32, #tpu.memory_space<vmem>>, %arg3: memref<64x128xf32, #tpu.memory_space<vmem>>, %arg4: memref<128x128xf32, #tpu.memory_space<vmem>>) attributes {dimension_semantics = [#tpu.dimension_semantics<parallel>], iteration_bounds = array<i64: 2>, scalar_prefetch = 0 : i64, scratch_operands = 0 : i64, tpu.core_type = #tpu.core_type<tc>, window_params = [{pipeline_mode = #tpu.pipeline_mode<synchronous>, transform_indices = @transform_0, window_bounds = array<i64: 128, 64>}, {pipeline_mode = #tpu.pipeline_mode<synchronous>, transform_indices = @transform_1, window_bounds = array<i64: 128, 1>}, {transform_indices = @transform_2, window_bounds = array<i64: 64, 128>}, {transform_indices = @transform_3, window_bounds = array<i64: 128, 128>}]} {
    %c0 = arith.constant 0 : index
    %c0_0 = arith.constant 0 : index
    %0 = vector.load %arg3[%c0, %c0_0] : memref<64x128xf32, #tpu.memory_space<vmem>>, vector<64x128xf32>
    %1 = arith.truncf %0 : vector<64x128xf32> to vector<64x128xbf16>
    %c0_1 = arith.constant 0 : index
    %c0_2 = arith.constant 0 : index
    %2 = vector.load %arg1[%c0_1, %c0_2] : memref<128x64xbf16, #tpu.memory_space<vmem>>, vector<128x64xbf16>
    %cst = arith.constant dense<0.000000e+00> : vector<128x128xf32>
    %3 = tpu.matmul %2, %1, %cst {dimension_numbers = #tpu.dot_dimension_numbers<[1], [0], [0], [1], [0, 0, 1, 1], [], []>} : vector<128x64xbf16>, vector<64x128xbf16>, vector<128x128xf32> -> vector<128x128xf32>
    %c0_3 = arith.constant 0 : index
    %c0_4 = arith.constant 0 : index
    %4 = vector.load %arg2[%c0_3, %c0_4] : memref<128x1xf32, #tpu.memory_space<vmem>>, vector<128x1xf32>
    %5 = vector.broadcast %4 : vector<128x1xf32> to vector<128x128xf32>
    %6 = arith.addf %3, %5 : vector<128x128xf32>
    %c0_5 = arith.constant 0 : index
    %c0_6 = arith.constant 0 : index
    %7 = vector.load %arg4[%c0_5, %c0_6] : memref<128x128xf32, #tpu.memory_space<vmem>>, vector<128x128xf32>
    tpu.vector_store %arg4[%c0_5, %c0_6], %6 {strides = array<i32>} : memref<128x128xf32, #tpu.memory_space<vmem>>, vector<128x128xf32>,
    return
  }
  func.func @transform_0(%arg0: i32) -> (i32, i32) {
    %c0_i32 = arith.constant 0 : i32
    %c0_i32_0 = arith.constant 0 : i32
    %c0_i32_1 = arith.constant 0 : i32
    return %c0_i32, %c0_i32_0 : i32, i32
  }
  func.func @transform_1(%arg0: i32) -> (i32, i32) {
    %c0_i32 = arith.constant 0 : i32
    %c0_i32_0 = arith.constant 0 : i32
    %c0_i32_1 = arith.constant 0 : i32
    return %c0_i32, %c0_i32_0 : i32, i32
  }
  func.func @transform_2(%arg0: i32) -> (i32, i32) {
    %c0_i32 = arith.constant 0 : i32
    %c0_i32_0 = arith.constant 0 : i32
    return %c0_i32, %arg0 : i32, i32
  }
  func.func @transform_3(%arg0: i32) -> (i32, i32) {
    %c0_i32 = arith.constant 0 : i32
    %c0_i32_0 = arith.constant 0 : i32
    return %c0_i32, %arg0 : i32, i32
  }
}

</mosaic_0001>

<bundles_post_ra>
// kernel: cgp_ode_block.2
= control target key start
LH: loop header
LB: loop body
LE: loop exit
PB: predicated region body
PF: predicated region fallthrough
CT: control target
= control target key end

     0   :  { %s1163_s0 = inlined_call_operand.vmem [shape: bf16[128,64], index: 0, kind: input, shape index: {}]   ;;  %s1164_s1 = inlined_call_operand.vmem [shape: f32[128,1], index: 1, kind: input, shape index: {}]   ;;  %s1165_s2 = inlined_call_operand.vmem [shape: f32[64,192], index: 2, kind: input, shape index: {}]   ;;  %s1166_s3 = inlined_call_operand.<no memory space> [shape: f32[], index: 3, kind: input, shape index: {}]   ;;  %s1167_s4 = inlined_call_operand.vmem [shape: f32[128,256], index: 4, kind: output, shape index: {}]  }
   0x1   :  { %v962_v0 = vstv %s1166_s3 }
   0x2   :  { %s964_s17 = smov 0   ;;  %s966_s18 = smov 0  }
   0x3   :  { %s968_s19 = smov 0  }
   0x4 LB: > { %s977_s3 = sadd.s32 4294967295, %s931_s19   ;;  %s979_s20 = sadd.s32 1, %s931_s19   ;;  %s931_s19 = sphi %s968_s19, %s1171_s19   ;;  %s927_s18 = sphi %s966_s18, %s1170_s18   ;;  %s923_s17 = sphi %s964_s17, %s1169_s17  }
   0x5   : > { %s87_s21 = ssub.s32 %s931_s19, %s979_s20  ;;  %s90_s22 = sadd.s32 1, %s927_s18 }
   0x6   : > { %p88_p0 = scmp.eq.s32.totalorder %s87_s21, 0  ;;  %p100_p1 = scmp.ne.s32.totalorder %s927_s18, %s923_s17 }
   0x7   : > { %p101_p2 = scmp.eq.s32.totalorder %s977_s3, 1  ;;  %p792_p3 = scmp.ge.s32.totalorder %s931_s19, 1 }
   0x8   : > { %s987_s23 = scalar_select %p88_p0, %s927_s18, %s90_s22  }
   0x9   : > { %p989_p4 = por %p101_p2, %p100_p1  ;;  %p146_p5 = scmp.lt.s32.totalorder %s931_s19, 3 }
   0xb   : > { %p147_p6 = pnand %p792_p3, %p146_p5 }
   0xc   : > { %p176_p7 = scmp.lt.s32.totalorder (!%p147_p6), %s977_s3, 1  ;;  %s184_s25 = ssub.s32 (!%p147_p6), 1, %s977_s3  ;;  %v193_v1 = vlaneseq (!%p147_p6)  ;;  %v901_v3 = vld [vmem:[%s1163_s0] sm:$0xff] (!%p147_p6)   ;;  %vm499_vm0 = vcmask (!%p147_p6), 523264   ;;  %v933_v10 = vmov (!%p147_p6), 0   ;;  %v365_v34 = vld [vmem:[%s1164_s1 + $0x10] sm:$0xff] (!%p147_p6) }
   0xd   : > { %150 = sbr.rel (%p147_p6) target bundleno = 280 (0x118), region = 32  ;;  %p185_p8 = scmp.lt.s32.totalorder (!%p147_p6), %s184_s25, 0  ;;  %v189_v2 = vstv (!%p147_p6), %s184_s25  ;;  %v902_v6 = vld [vmem:[%s1163_s0 + $0x20] sm:$0xff] (!%p147_p6)   ;;  %850 = vmatprep.mubr.msk.bf16.mxu0 (!%p147_p6), %vm499_vm0, %v901_v3  ;;  %900 = vset.pattern.permute.xlu1 (!%p147_p6), %v933_v10  ;;  %v366_v38 = vld [vmem:[%s1164_s1 + $0x18] sm:$0xff] (!%p147_p6)  ;;  %v364_v39 = vld [vmem:[%s1164_s1 + $0x8] sm:$0xff] (!%p147_p6) }
   0xe   : > { %s795_s26 = sshll.u32 (!%p147_p6), %s977_s3, 7  ;;  %v194_v4 = vand.u32 (!%p147_p6), 127, %v193_v1  ;;  %vm190_vm1 = vcmp.lt.s32.totalorder (!%p147_p6), %v189_v2, 0  ;;  %858 = vmatprep.mubr.msk.bf16.mxu1 (!%p147_p6), %vm499_vm0, %v902_v6  ;;  %899 = vset.pattern.permute.xlu0 (!%p147_p6), %v933_v10  ;;  %v363_v35 = vld [vmem:[%s1164_s1] sm:$0xff] (!%p147_p6)  ;;  %v368_v41 = vld [vmem:[%s1164_s1 + $0x28] sm:$0xff] (!%p147_p6)  ;;  %v370_v45 = vld [vmem:[%s1164_s1 + $0x38] sm:$0xff] (!%p147_p6) }
   0xf   : > { %v195_v5 = vstv (!%p147_p6), %s795_s26  ;;  %391 = vperm.xlu1 (!%p147_p6), %900, %v365_v34   ;;  %381 = vperm.xlu0 (!%p147_p6), %899, %v363_v35   ;;  %v367_v42 = vld [vmem:[%s1164_s1 + $0x20] sm:$0xff] (!%p147_p6)  ;;  %v903_v43 = vld [vmem:[%s1163_s0 + $0x8] sm:$0xff] (!%p147_p6)   ;;  %v369_v46 = vld [vmem:[%s1164_s1 + $0x30] sm:$0xff] (!%p147_p6)  ;;  %s169_s13 = sand.u32 (!%p147_p6), 1, %s923_s17  }
  0x10   : > { %v196_v7 = vadd.s32 (!%p147_p6), %v195_v5, %v194_v4  ;;  %v904_v44 = vld [vmem:[%s1163_s0 + $0x28] sm:$0xff] (!%p147_p6)   ;;  %v905_v47 = vld [vmem:[%s1163_s0 + $0x10] sm:$0xff] (!%p147_p6)   ;;  %v371_v50 = vld [vmem:[%s1164_s1 + $0x40] sm:$0xff] (!%p147_p6)  ;;  %s793_s14 = sshll.u32 (!%p147_p6), %s169_s13, 7 }
  0x11   : > { %v906_v48 = vld [vmem:[%s1163_s0 + $0x30] sm:$0xff] (!%p147_p6)   ;;  %v372_v49 = vld [vmem:[%s1164_s1 + $0x48] sm:$0xff] (!%p147_p6)  ;;  %v907_v51 = vld [vmem:[%s1163_s0 + $0x18] sm:$0xff] (!%p147_p6)   ;;  %s1113_s15 = scalar_lea.vmem (!%p147_p6), [#allocation7], %s793_s14 }
  0x12   : > { %vm197_vm2 = vcmp.lt.s32.totalorder (!%p147_p6), %v196_v7, 192  ;;  %v908_v52 = vld [vmem:[%s1163_s0 + $0x38] sm:$0xff] (!%p147_p6)   ;;  %v373_v54 = vld [vmem:[%s1164_s1 + $0x50] sm:$0xff] (!%p147_p6)  ;;  %v376_v55 = vld [vmem:[%s1164_s1 + $0x68] sm:$0xff] (!%p147_p6) }
  0x13   : > { %396 = vperm.xlu1 (!%p147_p6), %900, %v366_v38   ;;  %386 = vperm.xlu0 (!%p147_p6), %899, %v364_v39   ;;  %v374_v53 = vld [vmem:[%s1164_s1 + $0x58] sm:$0xff] (!%p147_p6)  ;;  %v375_v56 = vld [vmem:[%s1164_s1 + $0x60] sm:$0xff] (!%p147_p6)  ;;  %v377_v58 = vld [vmem:[%s1164_s1 + $0x70] sm:$0xff] (!%p147_p6) }
  0x14   : > { %s177_s29 = scalar_select %p176_p7, %s977_s3, 1  ;;  %v378_v57 = vld [vmem:[%s1164_s1 + $0x78] sm:$0xff] }
  0x15   : > { %s186_s6 = scalar_select %p185_p8, 0, 255 }
  0x16   : > { %s794_s7 = sshll.u32 %s177_s29, 3  ;;  %s827_s17 = sshll.u32 (%p989_p4), %s977_s3, 3 }
  0x17   : > { %s179_s10 = scalar_lea.vmem %s1165_s2, %s794_s7  ;;  %406 = vperm.xlu1 %900, %v368_v41   ;;  %401 = vperm.xlu0 %899, %v367_v42   ;;  %s645_s21 = scalar_lea.vmem (%p989_p4), %s1167_s4, %s827_s17 }
  0x18   : > { %v187_v8 = vld [vmem:[%s179_s10] sm:%s186_s6]  ;;  %v796_v9 = vld [vmem:[%s179_s10 + $0x10] sm:%s186_s6] }
  0x19   : > { %v191_v11 = vsel %vm190_vm1, %v962_v0, %v187_v8  ;;  %v209_v12 = vsel %vm190_vm1, %v962_v0, %v796_v9  ;;  %v798_v13 = vld [vmem:[%s179_s10 + $0x20] sm:%s186_s6]  ;;  %v800_v14 = vld [vmem:[%s179_s10 + $0x30] sm:%s186_s6] }
  0x1a   : > { %v198_v15 = vsel %vm197_vm2, %v191_v11, %v962_v0  ;;  %v216_v16 = vsel %vm197_vm2, %v209_v12, %v962_v0  ;;  %v228_v17 = vsel %vm190_vm1, %v962_v0, %v798_v13  ;;  %v247_v18 = vsel %vm190_vm1, %v962_v0, %v800_v14  ;;  %v802_v19 = vld [vmem:[%s179_s10 + $0x40] sm:%s186_s6]  ;;  %v804_v20 = vld [vmem:[%s179_s10 + $0x50] sm:%s186_s6] }
  0x1b   : > { %v343_v21 = vpack.c.bf16 %v216_v16, %v198_v15  ;;  %v235_v22 = vsel %vm197_vm2, %v228_v17, %v962_v0  ;;  %v254_v23 = vsel %vm197_vm2, %v247_v18, %v962_v0  ;;  %v266_v24 = vsel %vm190_vm1, %v962_v0, %v802_v19  ;;  %v806_v25 = vld [vmem:[%s179_s10 + $0x60] sm:%s186_s6]  ;;  %v808_v26 = vld [vmem:[%s179_s10 + $0x70] sm:%s186_s6]  ;;  %416 = vperm.xlu1 %900, %v370_v45  }
  0x1c   : > { %v344_v27 = vpack.c.bf16 %v254_v23, %v235_v22  ;;  %v273_v28 = vsel %vm197_vm2, %v266_v24, %v962_v0  ;;  %v285_v29 = vsel %vm190_vm1, %v962_v0, %v804_v20  ;;  %v304_v31 = vsel %vm190_vm1, %v962_v0, %v806_v25  ;;  %411 = vperm.xlu0 %899, %v369_v46  }
  0x1d   : > { %842 = vmatprep.subr.bf16.mxu0 %v343_v21  ;;  %866 = vmatprep.subr.bf16.mxu1 %v343_v21  ;;  %v292_v30 = vsel %vm197_vm2, %v285_v29, %v962_v0  ;;  %v323_v32 = vsel %vm190_vm1, %v962_v0, %v808_v26  ;;  %v311_v36 = vsel %vm197_vm2, %v304_v31, %v962_v0 }
  0x1e   : > { %843 = vmatpush3.bf16.msra.mxu0 %v343_v21  ;;  %870 = vmatpush3.bf16.msra.mxu1 %v343_v21  ;;  %v345_v33 = vpack.c.bf16 %v292_v30, %v273_v28  ;;  %v330_v37 = vsel %vm197_vm2, %v323_v32, %v962_v0 }
  0x1f   : > { %844 = vmatprep.subr.bf16.mxu0 %v344_v27  ;;  %867 = vmatprep.subr.bf16.mxu1 %v344_v27  ;;  %v346_v40 = vpack.c.bf16 %v330_v37, %v311_v36 }
  0x20   : > { %426 = vperm.xlu1 %900, %v372_v49   ;;  %421 = vperm.xlu0 %899, %v371_v50  }
  0x22   : > { %845 = vmatpush3.bf16.msra.mxu0 %v344_v27  ;;  %871 = vmatpush3.bf16.msra.mxu1 %v344_v27 }
  0x23   : > { %846 = vmatprep.subr.bf16.mxu0 %v345_v33  ;;  %868 = vmatprep.subr.bf16.mxu1 %v345_v33 }
  0x24   : > { %436 = vperm.xlu1 %900, %v374_v53   ;;  %431 = vperm.xlu0 %899, %v373_v54  }
  0x26   : > { %847 = vmatpush3.bf16.msra.mxu0 %v345_v33  ;;  %872 = vmatpush3.bf16.msra.mxu1 %v345_v33 }
  0x27   : > { %848 = vmatprep.subr.bf16.mxu0 %v346_v40  ;;  %869 = vmatprep.subr.bf16.mxu1 %v346_v40 }
  0x28   : > { %446 = vperm.xlu1 %900, %v376_v55   ;;  %441 = vperm.xlu0 %899, %v375_v56  }
  0x2a   : > { %849 = vmatpush3.bf16.msra.mxu0 %v346_v40  ;;  %873 = vmatpush3.bf16.msra.mxu1 %v346_v40 }
  0x2c   : > { %456 = vperm.xlu1 %900, %v378_v57   ;;  %451 = vperm.xlu0 %899, %v377_v58  }
  0x2d   : > { %851 = vmatmul.mubr.msk.bf16.vlgmr.msra.gmra.mrb[0].mxu0 %vm499_vm0, %v903_v43  ;;  %859 = vmatmul.mubr.msk.bf16.vlgmr.msra.gmra.mrb[0].mxu1 %vm499_vm0, %v904_v44 }
  0x2e   : > { %854 = vmatprep.mubr.msk.bf16.mxu0 %vm499_vm0, %v905_v47  ;;  %862 = vmatprep.mubr.msk.bf16.mxu1 %vm499_vm0, %v906_v48 }
  0x35   : > { %855 = vmatmul.mubr.msk.bf16.gmra.mrb[4].mxu0 %vm499_vm0, %v907_v51  ;;  %863 = vmatmul.mubr.msk.bf16.gmra.mrb[4].mxu1 %vm499_vm0, %v908_v52 }
  0x8e   : > { %v392_v59 = vpop.permute.xlu1 %391  ;;  %v382_v60 = vpop.permute.xlu0 %381 }
  0x92   : > { %v397_v61 = vpop.permute.xlu1 %396  ;;  %v387_v62 = vpop.permute.xlu0 %386 }
  0x96   : > { %v407_v63 = vpop.permute.xlu1 %406  ;;  %v402_v1 = vpop.permute.xlu0 %401 }
  0x9a   : > { %v417_v2 = vpop.permute.xlu1 %416 }
  0x9b   : > { %v412_v3 = vpop.permute.xlu0 %411 }
  0x9f   : > { %v427_v4 = vpop.permute.xlu1 %426  ;;  %v422_v5 = vpop.permute.xlu0 %421 }
  0xa3   : > { %v437_v6 = vpop.permute.xlu1 %436  ;;  %v432_v7 = vpop.permute.xlu0 %431 }
  0xa7   : > { %v447_v8 = vpop.permute.xlu1 %446  ;;  %v442_v9 = vpop.permute.xlu0 %441 }
  0xab   : > { %v457_v26 = vpop.permute.xlu1 %456  ;;  %v452_v27 = vpop.permute.xlu0 %451 }
 0x100   : > { %v852_v10 = vpop.f32.mrb[0].mxu0  ;;  %v860_v11 = vpop.f32.mrb[0].mxu1 }
 0x101   : > { %v567_v12 = vadd.f32 %v852_v10, %v392_v59  ;;  %v599_v13 = vadd.f32 %v860_v11, %v432_v7  ;;  %v558_v14 = vpop.f32.mrb[1].mxu0  ;;  %v590_v15 = vpop.f32.mrb[1].mxu1 }
 0x102   : > { %v559_v16 = vadd.f32 %v558_v14, %v382_v60  ;;  %v591_v17 = vadd.f32 %v590_v15, %v422_v5  ;;  %v853_v18 = vpop.f32.mrb[2].mxu0  ;;  %v861_v19 = vpop.f32.mrb[2].mxu1 }
 0x103   : > { %623 = vst [vmem:[%s1113_s15 + $0x10] sm:$0xff] %v567_v12  ;;  %631 = vst [vmem:[%s1113_s15 + $0x50] sm:$0xff] %v599_v13  ;;  %v570_v20 = vadd.f32 %v853_v18, %v397_v61  ;;  %v602_v21 = vadd.f32 %v861_v19, %v437_v6  ;;  %v561_v22 = vpop.f32.mrb[3].mxu0  ;;  %v593_v23 = vpop.f32.mrb[3].mxu1 }
 0x104   : > { %621 = vst [vmem:[%s1113_s15] sm:$0xff] %v559_v16  ;;  %629 = vst [vmem:[%s1113_s15 + $0x40] sm:$0xff] %v591_v17  ;;  %v562_v24 = vadd.f32 %v561_v22, %v387_v62  ;;  %v594_v25 = vadd.f32 %v593_v23, %v427_v4 }
 0x105   : > { %624 = vst [vmem:[%s1113_s15 + $0x18] sm:$0xff] %v570_v20  ;;  %632 = vst [vmem:[%s1113_s15 + $0x58] sm:$0xff] %v602_v21 }
 0x106   : > { %622 = vst [vmem:[%s1113_s15 + $0x8] sm:$0xff] %v562_v24  ;;  %630 = vst [vmem:[%s1113_s15 + $0x48] sm:$0xff] %v594_v25 }
 0x108   : > { %v856_v28 = vpop.f32.mrb[4].mxu0  ;;  %v864_v29 = vpop.f32.mrb[4].mxu1  ;;  %643 = sbr.rel (!%p989_p4) target bundleno = 280 (0x118), region = 36 }
 0x109   : > { %v583_v30 = vadd.f32 %v856_v28, %v412_v3  ;;  %v615_v31 = vadd.f32 %v864_v29, %v452_v27  ;;  %v574_v32 = vpop.f32.mrb[5].mxu0  ;;  %v606_v33 = vpop.f32.mrb[5].mxu1 }
 0x10a   : > { %v575_v34 = vadd.f32 %v574_v32, %v402_v1  ;;  %v607_v35 = vadd.f32 %v606_v33, %v442_v9  ;;  %v857_v36 = vpop.f32.mrb[6].mxu0  ;;  %v865_v37 = vpop.f32.mrb[6].mxu1  ;;  %v707_v46 = vld [vmem:[%s1113_s15 + $0x10] sm:$0xff] (%p989_p4) }
 0x10b   : > { %627 = vst [vmem:[%s1113_s15 + $0x30] sm:$0xff] %v583_v30  ;;  %635 = vst [vmem:[%s1113_s15 + $0x70] sm:$0xff] %v615_v31  ;;  %v586_v38 = vadd.f32 %v857_v36, %v417_v2  ;;  %v618_v39 = vadd.f32 %v865_v37, %v457_v26  ;;  %v577_v40 = vpop.f32.mrb[7].mxu0  ;;  %v609_v41 = vpop.f32.mrb[7].mxu1  ;;  %v703_v44 = vld [vmem:[%s1113_s15] sm:$0xff] (%p989_p4)  ;;  %v723_v54 = vld [vmem:[%s1113_s15 + $0x50] sm:$0xff] (%p989_p4) }
 0x10c   : > { %625 = vst [vmem:[%s1113_s15 + $0x20] sm:$0xff] %v575_v34  ;;  %633 = vst [vmem:[%s1113_s15 + $0x60] sm:$0xff] %v607_v35  ;;  %v578_v42 = vadd.f32 %v577_v40, %v407_v63  ;;  %v610_v43 = vadd.f32 %v609_v41, %v447_v8  ;;  %v709_v47 = vld [vmem:[%s1113_s15 + $0x18] sm:$0xff] (%p989_p4)  ;;  %v719_v52 = vld [vmem:[%s1113_s15 + $0x40] sm:$0xff] (%p989_p4) }
 0x10d   : > { %628 = vst [vmem:[%s1113_s15 + $0x38] sm:$0xff] %v586_v38  ;;  %636 = vst [vmem:[%s1113_s15 + $0x78] sm:$0xff] %v618_v39  ;;  %v705_v45 = vld [vmem:[%s1113_s15 + $0x8] sm:$0xff] (%p989_p4)  ;;  %v725_v55 = vld [vmem:[%s1113_s15 + $0x58] sm:$0xff] (%p989_p4) }
 0x10e   : > { %626 = vst [vmem:[%s1113_s15 + $0x28] sm:$0xff] %v578_v42  ;;  %634 = vst [vmem:[%s1113_s15 + $0x68] sm:$0xff] %v610_v43  ;;  %v721_v53 = vld [vmem:[%s1113_s15 + $0x48] sm:$0xff] (%p989_p4) }
 0x10f   : > { %704 = vst [vmem:[%s645_s21] sm:$0xff] %v703_v44  ;;  %706 = vst [vmem:[%s645_s21 + $0x10] sm:$0xff] %v705_v45 }
 0x110   : > { %708 = vst [vmem:[%s645_s21 + $0x20] sm:$0xff] %v707_v46  ;;  %710 = vst [vmem:[%s645_s21 + $0x30] sm:$0xff] %v709_v47 }
 0x111   : > { %720 = vst [vmem:[%s645_s21 + $0x80] sm:$0xff] %v719_v52  ;;  %722 = vst [vmem:[%s645_s21 + $0x90] sm:$0xff] %v721_v53 }
 0x112   : > { %v715_v50 = vld [vmem:[%s1113_s15 + $0x30] sm:$0xff]  ;;  %724 = vst [vmem:[%s645_s21 + $0xa0] sm:$0xff] %v723_v54  ;;  %726 = vst [vmem:[%s645_s21 + $0xb0] sm:$0xff] %v725_v55 }
 0x113   : > { %v711_v48 = vld [vmem:[%s1113_s15 + $0x20] sm:$0xff]  ;;  %716 = vst [vmem:[%s645_s21 + $0x60] sm:$0xff] %v715_v50  ;;  %v731_v58 = vld [vmem:[%s1113_s15 + $0x70] sm:$0xff] }
 0x114   : > { %712 = vst [vmem:[%s645_s21 + $0x40] sm:$0xff] %v711_v48  ;;  %v717_v51 = vld [vmem:[%s1113_s15 + $0x38] sm:$0xff]  ;;  %v727_v56 = vld [vmem:[%s1113_s15 + $0x60] sm:$0xff]  ;;  %732 = vst [vmem:[%s645_s21 + $0xe0] sm:$0xff] %v731_v58 }
 0x115   : > { %v713_v49 = vld [vmem:[%s1113_s15 + $0x28] sm:$0xff]  ;;  %718 = vst [vmem:[%s645_s21 + $0x70] sm:$0xff] %v717_v51  ;;  %728 = vst [vmem:[%s645_s21 + $0xc0] sm:$0xff] %v727_v56  ;;  %v733_v59 = vld [vmem:[%s1113_s15 + $0x78] sm:$0xff] }
 0x116   : > { %714 = vst [vmem:[%s645_s21 + $0x50] sm:$0xff] %v713_v49  ;;  %v729_v57 = vld [vmem:[%s1113_s15 + $0x68] sm:$0xff]  ;;  %734 = vst [vmem:[%s645_s21 + $0xf0] sm:$0xff] %v733_v59 }
 0x117   : > { %730 = vst [vmem:[%s645_s21 + $0xd0] sm:$0xff] %v729_v57 }
 0x118 PF: > { %p12_p9 = scmp.ge.s32.totalorder %s979_s20, 4   ;;  %s1169_s17 = smov %s927_s18 }
 0x119   : > { %s1170_s18 = smov %s987_s23  ;;  %s1171_s19 = smov %s979_s20 }
 0x11a   :  { %14 = sbr.rel (!%p12_p9) target bundleno = 4 (0x4), region = 114 }

</bundles_post_ra>
